<compile_context>
chip_gen: v7x
topology: tpu7x:2x2x1
jax: 0.10.0
libtpu: 0.0.40
codegen_flags: <defaults>
</compile_context>

<pallas_src>
import jax
import jax.numpy as jnp
from jax.experimental import pallas as pl
from jax.experimental.pallas import tpu as pltpu

# Small, self-consistent shapes for the Critic MLP.
BATCH = 8
INPUT_DIM = 64
HIDDEN_DIM = 128


# -----------------------------------------------------------------------------
# Fused kernel: fc1 -> ReLU -> fc2, whole problem in one body (grid=(1,)).
# -----------------------------------------------------------------------------
def _critic_kernel(x_ref, w1_ref, b1_ref, w2_ref, b2_ref, out_ref):
    # x_ref : (BATCH, INPUT_DIM)       w1_ref: (INPUT_DIM, HIDDEN_DIM)
    # b1_ref: (1, HIDDEN_DIM)          w2_ref: (1, HIDDEN_DIM)  (fc2 weight row)
    # b2_ref: (1, 1)                   out   : (BATCH, 1)
    x = x_ref[...]

    # fc1 on the MXU with f32 accumulation, bias broadcast hoisted (single add),
    # ReLU on the VPU.
    h = jnp.dot(x, w1_ref[...], preferred_element_type=jnp.float32) + b1_ref[...]
    h = jnp.maximum(h, 0.0)

    # fc2 (HIDDEN_DIM -> 1): keep the weight lane-dense as a (1, HIDDEN_DIM) row
    # and contract with one cross-lane (XLU) reduction; avoids a (H, 1) matmul
    # whose RHS would occupy a single output lane.
    v = jnp.sum(h * w2_ref[...], axis=-1, keepdims=True) + b2_ref[...]
    out_ref[...] = v


def critic_forward(x, params):
    w1, b1, w2, b2 = params
    b, in_dim = x.shape
    hid = w1.shape[1]
    return pl.pallas_call(
        _critic_kernel,
        out_shape=jax.ShapeDtypeStruct((b, 1), jnp.float32),
        grid=(1,),
        in_specs=[
            pl.BlockSpec((b, in_dim), lambda i: (0, 0)),      # x
            pl.BlockSpec((in_dim, hid), lambda i: (0, 0)),    # fc1 weight (in, hid)
            pl.BlockSpec((1, hid), lambda i: (0, 0)),         # fc1 bias
            pl.BlockSpec((1, hid), lambda i: (0, 0)),         # fc2 weight row
            pl.BlockSpec((1, 1), lambda i: (0, 0)),           # fc2 bias
        ],
        out_specs=pl.BlockSpec((b, 1), lambda i: (0, 0)),
        compiler_params=pltpu.CompilerParams(
            dimension_semantics=("arbitrary",)),
    )(x, w1, b1, w2, b2)


# -----------------------------------------------------------------------------
# Pure-JAX reference mirroring the PyTorch Critic (weights pre-transposed to
# (in, out) layout; fc2 weight kept as a (1, hidden) row like torch's Linear).
# -----------------------------------------------------------------------------
def reference_forward(x, params):
    w1, b1, w2, b2 = params
    h = jnp.maximum(x @ w1 + b1, 0.0)
    return h @ w2.T + b2                      # (BATCH, 1)


def make_params(key):
    k1, k2, k3, k4 = jax.random.split(key, 4)
    w1 = jax.random.normal(k1, (INPUT_DIM, HIDDEN_DIM), jnp.float32) * 0.05
    b1 = jax.random.normal(k2, (1, HIDDEN_DIM), jnp.float32) * 0.05
    w2 = jax.random.normal(k3, (1, HIDDEN_DIM), jnp.float32) * 0.05
    b2 = jax.random.normal(k4, (1, 1), jnp.float32) * 0.05
    return (w1, b1, w2, b2)


if __name__ == "__main__":
    key = jax.random.PRNGKey(0)
    pkey, xkey = jax.random.split(key)
    params = make_params(pkey)
    x = jax.random.normal(xkey, (BATCH, INPUT_DIM), jnp.float32)

    value = jax.block_until_ready(critic_forward(x, params))

    ref = reference_forward(x, params)
    assert value.shape == (BATCH, 1)
    assert jnp.allclose(value, ref, atol=1e-4, rtol=1e-4)

    print("KERNEL_OK")
</pallas_src>

<mosaic_0001>
module attributes {stable_mosaic.version = 11 : i64} {
  func.func @_critic_kernel(%arg0: i32, %arg1: memref<8x64xf32, #tpu.memory_space<vmem>>, %arg2: memref<64x128xf32, #tpu.memory_space<vmem>>, %arg3: memref<1x128xf32, #tpu.memory_space<vmem>>, %arg4: memref<1x128xf32, #tpu.memory_space<vmem>>, %arg5: memref<1x1xf32, #tpu.memory_space<vmem>>, %arg6: memref<8x1xf32, #tpu.memory_space<vmem>>) attributes {dimension_semantics = [#tpu.dimension_semantics<arbitrary>], iteration_bounds = array<i64: 1>, scalar_prefetch = 0 : i64, scratch_operands = 0 : i64, tpu.core_type = #tpu.core_type<tc>, window_params = [{pipeline_mode = #tpu.pipeline_mode<synchronous>, transform_indices = @transform_0, window_bounds = array<i64: 8, 64>}, {pipeline_mode = #tpu.pipeline_mode<synchronous>, transform_indices = @transform_1, window_bounds = array<i64: 64, 128>}, {pipeline_mode = #tpu.pipeline_mode<synchronous>, transform_indices = @transform_2, window_bounds = array<i64: 1, 128>}, {pipeline_mode = #tpu.pipeline_mode<synchronous>, transform_indices = @transform_3, window_bounds = array<i64: 1, 128>}, {pipeline_mode = #tpu.pipeline_mode<synchronous>, transform_indices = @transform_4, window_bounds = array<i64: 1, 1>}, {pipeline_mode = #tpu.pipeline_mode<synchronous>, transform_indices = @transform_5, window_bounds = array<i64: 8, 1>}]} {
    %c0 = arith.constant 0 : index
    %c0_0 = arith.constant 0 : index
    %0 = vector.load %arg1[%c0, %c0_0] : memref<8x64xf32, #tpu.memory_space<vmem>>, vector<8x64xf32>
    %c0_1 = arith.constant 0 : index
    %c0_2 = arith.constant 0 : index
    %1 = vector.load %arg2[%c0_1, %c0_2] : memref<64x128xf32, #tpu.memory_space<vmem>>, vector<64x128xf32>
    %cst = arith.constant dense<0.000000e+00> : vector<8x128xf32>
    %2 = tpu.matmul %0, %1, %cst {dimension_numbers = #tpu.dot_dimension_numbers<[1], [0], [0], [1], [0, 0, 1, 1], [], []>} : vector<8x64xf32>, vector<64x128xf32>, vector<8x128xf32> -> vector<8x128xf32>
    %c0_3 = arith.constant 0 : index
    %c0_4 = arith.constant 0 : index
    %3 = vector.load %arg3[%c0_3, %c0_4] : memref<1x128xf32, #tpu.memory_space<vmem>>, vector<1x128xf32>
    %4 = vector.broadcast %3 : vector<1x128xf32> to vector<8x128xf32>
    %5 = arith.addf %2, %4 : vector<8x128xf32>
    %cst_5 = arith.constant 0.000000e+00 : f32
    %6 = vector.broadcast %cst_5 : f32 to vector<8x128xf32>
    %7 = arith.maximumf %5, %6 : vector<8x128xf32>
    %c0_6 = arith.constant 0 : index
    %c0_7 = arith.constant 0 : index
    %8 = vector.load %arg4[%c0_6, %c0_7] : memref<1x128xf32, #tpu.memory_space<vmem>>, vector<1x128xf32>
    %9 = vector.broadcast %8 : vector<1x128xf32> to vector<8x128xf32>
    %10 = arith.mulf %7, %9 : vector<8x128xf32>
    %cst_8 = arith.constant dense<0.000000e+00> : vector<8xf32>
    %11 = vector.multi_reduction <add>, %10, %cst_8 [1] : vector<8x128xf32> to vector<8xf32>
    %12 = vector.shape_cast %11 : vector<8xf32> to vector<8x1xf32>
    %c0_9 = arith.constant 0 : index
    %c0_10 = arith.constant 0 : index
    %13 = vector.load %arg5[%c0_9, %c0_10] : memref<1x1xf32, #tpu.memory_space<vmem>>, vector<1x1xf32>
    %14 = vector.broadcast %13 : vector<1x1xf32> to vector<8x1xf32>
    %15 = arith.addf %12, %14 : vector<8x1xf32>
    %c0_11 = arith.constant 0 : index
    %c0_12 = arith.constant 0 : index
    %16 = vector.load %arg6[%c0_11, %c0_12] : memref<8x1xf32, #tpu.memory_space<vmem>>, vector<8x1xf32>
    tpu.vector_store %arg6[%c0_11, %c0_12], %15 {strides = array<i32>} : memref<8x1xf32, #tpu.memory_space<vmem>>, vector<8x1xf32>,
    return
  }
  func.func @transform_0(%arg0: i32) -> (i32, i32) {
    %c0_i32 = arith.constant 0 : i32
    %c0_i32_0 = arith.constant 0 : i32
    %c0_i32_1 = arith.constant 0 : i32
    return %c0_i32, %c0_i32_0 : i32, i32
  }
  func.func @transform_1(%arg0: i32) -> (i32, i32) {
    %c0_i32 = arith.constant 0 : i32
    %c0_i32_0 = arith.constant 0 : i32
    %c0_i32_1 = arith.constant 0 : i32
    return %c0_i32, %c0_i32_0 : i32, i32
  }
  func.func @transform_2(%arg0: i32) -> (i32, i32) {
    %c0_i32 = arith.constant 0 : i32
    %c0_i32_0 = arith.constant 0 : i32
    %c0_i32_1 = arith.constant 0 : i32
    return %c0_i32, %c0_i32_0 : i32, i32
  }
  func.func @transform_3(%arg0: i32) -> (i32, i32) {
    %c0_i32 = arith.constant 0 : i32
    %c0_i32_0 = arith.constant 0 : i32
    %c0_i32_1 = arith.constant 0 : i32
    return %c0_i32, %c0_i32_0 : i32, i32
  }
  func.func @transform_4(%arg0: i32) -> (i32, i32) {
    %c0_i32 = arith.constant 0 : i32
    %c0_i32_0 = arith.constant 0 : i32
    %c0_i32_1 = arith.constant 0 : i32
    return %c0_i32, %c0_i32_0 : i32, i32
  }
  func.func @transform_5(%arg0: i32) -> (i32, i32) {
    %c0_i32 = arith.constant 0 : i32
    %c0_i32_0 = arith.constant 0 : i32
    %c0_i32_1 = arith.constant 0 : i32
    return %c0_i32, %c0_i32_0 : i32, i32
  }
}

</mosaic_0001>

<bundles_post_ra>
// kernel: tpu_custom_call.1
= control target key start
LH: loop header
LB: loop body
LE: loop exit
PB: predicated region body
PF: predicated region fallthrough
CT: control target
= control target key end

     0   :  { %s344_s0 = inlined_call_operand.hbm [shape: f32[8,64], index: 0, kind: input, shape index: {}]   ;;  %s345_s1 = inlined_call_operand.hbm [shape: f32[64,128], index: 1, kind: input, shape index: {}]   ;;  %s346_s2 = inlined_call_operand.vmem [shape: f32[1,128], index: 2, kind: input, shape index: {}]   ;;  %s347_s3 = inlined_call_operand.vmem [shape: f32[1,128], index: 3, kind: input, shape index: {}]   ;;  %s348_s4 = inlined_call_operand.<no memory space> [shape: f32[1,1], index: 4, kind: input, shape index: {}]   ;;  %s349_s5 = inlined_call_operand.vmem [shape: f32[8,1], index: 5, kind: output, shape index: {}]  }
   0x1   :  { %v10_v0 = vstv %s348_s4 }
   0x2   :  { %11 = vst [vmem:[#allocation2] sm:$0x1] %v10_v0 }
   0x3   :  { %12 = vsyncpa [#allocation4], 0 }
   0x4   :  { %13 = vsyncpa [#allocation6], 0  ;;  %s264_s20 = smov [#allocation3]   ;;  %s265_s22 = smov [#allocation5]  }
   0x5   :  { %s20_s21 = sshll.u32 %s264_s20, 4  ;;  %s29_s23 = sshll.u32 %s265_s22, 4  ;;  %s21_s21 = int_to_ptr.vmem [resolvable:$true] %s20_s21  ;;  %s304_s23 = int_to_ptr.vmem [resolvable:$true] %s29_s23 }
   0x6   :  { %s216_s26 = scalar_lea.hbm %s344_s0, 128 }
   0x7   :  { %p217_p0 = scmp.ne.s32.totalorder %s344_s0, %s216_s26  ;;  %p220_p1 = scmp.lt.u32.totalorder %s216_s26, %s344_s0 }
   0x9   :  { %p222_p2 = pnand %p220_p1, %p217_p0 }
   0xb   :  { %225 = shalt.err (!%p222_p2)
}
   0xc   :  { %s226_s30 = scalar_lea.vmem %s21_s21, 128  ;;  %p231_p4 = scmp.lt.s32.totalorder %s21_s21, %s21_s21 }
   0xd   :  { %p227_p3 = scmp.ne.s32.totalorder %s21_s21, %s226_s30  ;;  %p232_p5 = scmp.lt.s32.totalorder %s226_s30, %s226_s30 }
   0xf   :  { %p233_p6 = por %p232_p5, %p231_p4 }
  0x11   :  { %p234_p7 = pnand %p233_p6, %p227_p3 }
  0x13   :  { %237 = shalt.err (!%p234_p7)
}
  0x14   :  { %23 = dma.hbm_to_vmem [thread:$0]  %s344_s0, 128, %s21_s21, [#allocation4]  }
  0x15   :  { %s238_s10 = scalar_lea.hbm %s345_s1, 1024 }
  0x16   :  { %p239_p8 = scmp.ne.s32.totalorder %s345_s1, %s238_s10  ;;  %p242_p9 = scmp.lt.u32.totalorder %s238_s10, %s345_s1 }
  0x18   :  { %p244_p10 = pnand %p242_p9, %p239_p8 }
  0x1a   :  { %247 = shalt.err (!%p244_p10)
}
  0x1b   :  { %s248_s15 = scalar_lea.vmem %s304_s23, 1024  ;;  %p253_p12 = scmp.lt.s32.totalorder %s304_s23, %s304_s23 }
  0x1c   :  { %p249_p11 = scmp.ne.s32.totalorder %s304_s23, %s248_s15  ;;  %p254_p13 = scmp.lt.s32.totalorder %s248_s15, %s248_s15 }
  0x1e   :  { %p255_p0 = por %p254_p13, %p253_p12 }
  0x20   :  { %p256_p1 = pnand %p255_p0, %p249_p11 }
  0x22   :  { %259 = shalt.err (!%p256_p1)
}
  0x23   :  { %s266_s0 = smov 128   ;;  %s267_s16 = smov 8  }
  0x24   :  { %35 = dma.hbm_to_vmem [thread:$0]  %s345_s1, 1024, %s304_s23, [#allocation6], %s266_s0, %s266_s0, %s267_s16  }
  0x25   :  { %260 = dma.done.wait [#allocation4], 128  }
  0x26   :  { %261 = vsyncadd [#allocation4], 4294967168 }
  0x27   :  { %262 = dma.done.wait [#allocation6], 1024  }
  0x28   :  { %263 = vsyncadd [#allocation6], 4294966272  ;;  %v268_v1 = vmov 0.0|0.0   ;;  %vm269_vm0 = vmmov 0   ;;  %v270_v2 = vmov 0.0   ;;  %v49_v3 = vld [vmem:[#allocation5] sm:$0xff] }
  0x29   :  { %197 = vmatprep.subr.bf16.mxu0 %v268_v1  ;;  %194 = vmatprep.mubr.msk.f32.mxu0 %vm269_vm0, %v270_v2  ;;  %v50_v4 = vld [vmem:[#allocation5 + $0x8] sm:$0xff]  ;;  %v51_v5 = vld [vmem:[#allocation5 + $0x10] sm:$0xff]  ;;  %v52_v7 = vld [vmem:[#allocation5 + $0x18] sm:$0xff]  ;;  %vm64_vm1 = vcmask 523264   ;;  %vm157_vm2 = vcmask 7168  }
  0x2a   :  { %v198_v6 = vpack.c.bf16 %v50_v4, %v49_v3  ;;  %v201_v8 = vpack.c.bf16 %v52_v7, %v51_v5  ;;  %v53_v9 = vld [vmem:[#allocation5 + $0x20] sm:$0xff]  ;;  %v54_v10 = vld [vmem:[#allocation5 + $0x28] sm:$0xff]  ;;  %v55_v12 = vld [vmem:[#allocation5 + $0x30] sm:$0xff] }
  0x2b   :  { %v204_v11 = vpack.c.bf16 %v54_v10, %v53_v9  ;;  %v56_v13 = vld [vmem:[#allocation5 + $0x38] sm:$0xff]  ;;  %v165_v16 = vld [vmem:[%s346_s2] ss:$0 sm:$0xff] }
  0x2c   :  { %199 = vmatpush3.bf16.msra.mxu0 %v198_v6  ;;  %v207_v14 = vpack.c.bf16 %v56_v13, %v55_v12  ;;  %v48_v15 = vld [vmem:[#allocation3] sm:$0xff]  ;;  %v167_v20 = vld [vmem:[%s347_s3] ss:$0 sm:$0xff] }
  0x2d   :  { %200 = vmatprep.subr.bf16.mxu0 %v268_v1  ;;  %v168_v23 = vld [vmem:[#allocation2] ss:$0 sm:$0xff] }
  0x30   :  { %202 = vmatpush3.bf16.msra.mxu0 %v201_v8 }
  0x31   :  { %203 = vmatprep.subr.bf16.mxu0 %v268_v1 }
  0x34   :  { %205 = vmatpush3.bf16.msra.mxu0 %v204_v11 }
  0x35   :  { %206 = vmatprep.subr.bf16.mxu0 %v268_v1 }
  0x38   :  { %208 = vmatpush3.bf16.msra.mxu0 %v207_v14 }
  0x3b   :  { %195 = vmatmul.mubr.msk.f32.vlgmr.msra.gmra.mrb[0].mxu0 %vm64_vm1, %v48_v15 }
 0x10e   :  { %v134_v17 = vpop.f32.mrb[0].mxu0 }
 0x10f   :  { %v135_v18 = vadd.f32 %v165_v16, %v134_v17  ;;  %v196_v19 = vpop.f32.mrb[1].mxu0 }
 0x111   :  { %v138_v21 = vmax.f32 %v135_v18, 0.0 }
 0x113   :  { %v146_v22 = vmul.f32 %v167_v20, %v138_v21 }
 0x115   :  { %147 = vadd.xlane.f32.xlu0 %v146_v22 }
 0x1a2   :  { %v148_v24 = vpop.xlane.xlu0 %147 }
 0x1a3   :  { %v156_v25 = vadd.f32 %v168_v23, %v148_v24 }
 0x1a5   :  { %158 = vst.msk [vmem:[%s349_s5] sm:$0xff] %vm157_vm2, %v156_v25 }
 0x1a6   :  { %163 = vsyncpa [#allocation4], 1 }
 0x1a7   :  { %164 = vsyncpa [#allocation6], 1 }

</bundles_post_ra>
